<compile_context>
chip_gen: v6e
topology: v6e:2x2x1
jax: 0.10.0
libtpu: 0.0.40
codegen_flags: <defaults>
</compile_context>

<pallas_src>
import jax
import jax.numpy as jnp
from jax import lax
from jax.experimental import pallas as pl
from jax.experimental.pallas import tpu as pltpu

LN_EPS = 1e-5  # nn.LayerNorm default


def fused_conv_kernel(x_ref, w_ref, b_ref, g_ref, beta_ref, o_ref):
    # x_ref:    (C_in, TL)    NCW-native tile: channels on sublanes, positions on lanes
    # w_ref:    (C_out, C_in) full conv weight (k=1)
    # b_ref:    (C_out, 1)    conv bias (broadcast across lanes)
    # g_ref:    (C_out, 1)    LayerNorm gamma
    # beta_ref: (C_out, 1)    LayerNorm beta
    # o_ref:    (C_out, TL)   output tile, already in NCW layout
    y = jnp.dot(w_ref[...], x_ref[...], preferred_element_type=jnp.float32)
    y = y + b_ref[...]

    # LayerNorm over channels (the sublane axis) -> per-position stats (1, TL).
    c_out = y.shape[0]
    inv_c = 1.0 / c_out
    mean = jnp.sum(y, axis=0, keepdims=True) * inv_c
    centered = y - mean
    var = jnp.sum(centered * centered, axis=0, keepdims=True) * inv_c
    y_norm = centered * lax.rsqrt(var + LN_EPS)           # rsqrt -> EUP slot
    y_aff = y_norm * g_ref[...] + beta_ref[...]

    # ReLU
    o_ref[...] = jnp.maximum(y_aff, 0.0).astype(o_ref.dtype)


def fused_conv_forward(x, weight, bias, gamma, beta, *, tl=512):
    """x: (N, C_in, L) float32. weight: (C_out, C_in). Returns (N, C_out, L)."""
    N, C_in, L = x.shape
    C_out = weight.shape[0]

    # Lane-dense position tile: TL is a multiple of 128 when L is large,
    # otherwise the full (small) L so the block equals the array dim.
    if L >= tl:
        TL = tl
        L_pad = pl.cdiv(L, TL) * TL
    else:
        TL = L
        L_pad = L
    if L_pad != L:
        # Tail handling: pad positions with zeros; padded columns are sliced
        # off after the call (LayerNorm is per-position, so they don't affect
        # real outputs).
        x = jnp.pad(x, ((0, 0), (0, 0), (0, L_pad - L)))

    w = weight.astype(jnp.float32)
    b2d = bias.reshape(C_out, 1).astype(jnp.float32)
    g2d = gamma.reshape(C_out, 1).astype(jnp.float32)
    beta2d = beta.reshape(C_out, 1).astype(jnp.float32)

    # Explicit VMEM budget: 2x double-buffered x tile, 2x output tile,
    # resident weight + params, plus headroom.  Capped at 64 MiB for v7x.
    est_bytes = 4 * (2 * C_in * TL + 2 * C_out * TL + C_out * C_in + 3 * C_out)
    vmem_limit = int(min(max(2 * est_bytes + (8 << 20), 32 << 20), 64 << 20))

    grid = (N, L_pad // TL)

    out = pl.pallas_call(
        fused_conv_kernel,
        out_shape=jax.ShapeDtypeStruct((N, C_out, L_pad), x.dtype),
        grid_spec=pltpu.PrefetchScalarGridSpec(
            num_scalar_prefetch=0,
            grid=grid,
            in_specs=[
                # x: one batch element (squeezed), all channels, TL positions.
                pl.BlockSpec((None, C_in, TL), lambda n, l: (n, 0, l)),
                # Weight / bias / gamma / beta: resident, same block every step.
                pl.BlockSpec((C_out, C_in), lambda n, l: (0, 0)),
                pl.BlockSpec((C_out, 1), lambda n, l: (0, 0)),
                pl.BlockSpec((C_out, 1), lambda n, l: (0, 0)),
                pl.BlockSpec((C_out, 1), lambda n, l: (0, 0)),
            ],
            out_specs=pl.BlockSpec((None, C_out, TL), lambda n, l: (n, 0, l)),
        ),
        compiler_params=pltpu.CompilerParams(
            dimension_semantics=("parallel", "parallel"),
            vmem_limit_bytes=vmem_limit,
        ),
    )(x, w, b2d, g2d, beta2d)

    if L_pad != L:
        out = out[:, :, :L]
    return out


def reference_forward(x, weight, bias, gamma, beta):
    """Pure-JAX reference matching the PyTorch module."""
    # Conv1d k=1: (N, C_in, L) x (C_out, C_in) -> (N, C_out, L)
    y = jnp.einsum("ncl,oc->nol", x, weight) + bias[None, :, None]
    y = jnp.transpose(y, (0, 2, 1))  # (N, L, C_out)
    mean = jnp.mean(y, axis=-1, keepdims=True)
    var = jnp.mean((y - mean) ** 2, axis=-1, keepdims=True)
    y = (y - mean) / jnp.sqrt(var + LN_EPS)
    y = y * gamma + beta
    y = jnp.maximum(y, 0.0)
    return jnp.transpose(y, (0, 2, 1))  # (N, C_out, L)


if __name__ == "__main__":
    key = jax.random.PRNGKey(0)
    k_x, k_w, k_b, k_x2 = jax.random.split(key, 4)

    # Small shapes consistent with the module: Conv1d expects (N, C_in, L).
    N, C_in, C_out, L = 2, 4, 32, 16

    x = jax.random.normal(k_x, (N, C_in, L), dtype=jnp.float32)

    # Deterministic parameter init (synthetic, PyTorch-like uniform fan-in).
    bound = 1.0 / (C_in ** 0.5)
    weight = jax.random.uniform(k_w, (C_out, C_in), jnp.float32, -bound, bound)
    bias = jax.random.uniform(k_b, (C_out,), jnp.float32, -bound, bound)
    gamma = jnp.ones((C_out,), jnp.float32)   # LayerNorm weight init
    beta = jnp.zeros((C_out,), jnp.float32)   # LayerNorm bias init

    out = jax.block_until_ready(fused_conv_forward(x, weight, bias, gamma, beta))
    ref = jax.block_until_ready(reference_forward(x, weight, bias, gamma, beta))
    assert out.shape == (N, C_out, L)
    assert jnp.allclose(out, ref, atol=1e-5, rtol=1e-5)

    # Exercise the tiled + remainder-padding path (L not a multiple of the tile).
    L2 = 200
    x2 = jax.random.normal(k_x2, (N, C_in, L2), dtype=jnp.float32)
    out2 = jax.block_until_ready(
        fused_conv_forward(x2, weight, bias, gamma, beta, tl=128))
    ref2 = jax.block_until_ready(reference_forward(x2, weight, bias, gamma, beta))
    assert out2.shape == (N, C_out, L2)
    assert jnp.allclose(out2, ref2, atol=1e-5, rtol=1e-5)

    print("KERNEL_OK")
</pallas_src>

<mosaic_0001>
module attributes {stable_mosaic.version = 11 : i64} {
  func.func @fused_conv_kernel(%arg0: i32, %arg1: i32, %arg2: memref<1x4x16xf32, #tpu.memory_space<vmem>>, %arg3: memref<32x4xf32, #tpu.memory_space<vmem>>, %arg4: memref<32x1xf32, #tpu.memory_space<vmem>>, %arg5: memref<32x1xf32, #tpu.memory_space<vmem>>, %arg6: memref<32x1xf32, #tpu.memory_space<vmem>>, %arg7: memref<1x32x16xf32, #tpu.memory_space<vmem>>) attributes {dimension_semantics = [#tpu.dimension_semantics<parallel>, #tpu.dimension_semantics<parallel>], iteration_bounds = array<i64: 2, 1>, scalar_prefetch = 0 : i64, scratch_operands = 0 : i64, tpu.core_type = #tpu.core_type<tc>, window_params = [{transform_indices = @transform_0, window_bounds = array<i64: 1, 4, 16>}, {pipeline_mode = #tpu.pipeline_mode<synchronous>, transform_indices = @transform_1, window_bounds = array<i64: 32, 4>}, {pipeline_mode = #tpu.pipeline_mode<synchronous>, transform_indices = @transform_2, window_bounds = array<i64: 32, 1>}, {pipeline_mode = #tpu.pipeline_mode<synchronous>, transform_indices = @transform_3, window_bounds = array<i64: 32, 1>}, {pipeline_mode = #tpu.pipeline_mode<synchronous>, transform_indices = @transform_4, window_bounds = array<i64: 32, 1>}, {transform_indices = @transform_5, window_bounds = array<i64: 1, 32, 16>}]} {
    %c0 = arith.constant 0 : index
    %c0_0 = arith.constant 0 : index
    %0 = vector.load %arg3[%c0, %c0_0] : memref<32x4xf32, #tpu.memory_space<vmem>>, vector<32x4xf32>
    %c0_1 = arith.constant 0 : index
    %c0_2 = arith.constant 0 : index
    %c0_3 = arith.constant 0 : index
    %1 = vector.load %arg2[%c0_1, %c0_2, %c0_3] : memref<1x4x16xf32, #tpu.memory_space<vmem>>, vector<1x4x16xf32>
    %2 = vector.shape_cast %1 : vector<1x4x16xf32> to vector<4x16xf32>
    %cst = arith.constant dense<0.000000e+00> : vector<32x16xf32>
    %3 = tpu.matmul %0, %2, %cst {dimension_numbers = #tpu.dot_dimension_numbers<[1], [0], [0], [1], [0, 0, 1, 1], [], []>} : vector<32x4xf32>, vector<4x16xf32>, vector<32x16xf32> -> vector<32x16xf32>
    %c0_4 = arith.constant 0 : index
    %c0_5 = arith.constant 0 : index
    %4 = vector.load %arg4[%c0_4, %c0_5] : memref<32x1xf32, #tpu.memory_space<vmem>>, vector<32x1xf32>
    %5 = vector.broadcast %4 : vector<32x1xf32> to vector<32x16xf32>
    %6 = arith.addf %3, %5 : vector<32x16xf32>
    %cst_6 = arith.constant dense<0.000000e+00> : vector<16xf32>
    %7 = vector.multi_reduction <add>, %6, %cst_6 [0] : vector<32x16xf32> to vector<16xf32>
    %8 = vector.shape_cast %7 : vector<16xf32> to vector<1x16xf32>
    %cst_7 = arith.constant 3.125000e-02 : f32
    %9 = vector.broadcast %cst_7 : f32 to vector<1x16xf32>
    %10 = arith.mulf %8, %9 : vector<1x16xf32>
    %11 = vector.broadcast %10 : vector<1x16xf32> to vector<32x16xf32>
    %12 = arith.subf %6, %11 : vector<32x16xf32>
    %13 = arith.mulf %12, %12 : vector<32x16xf32>
    %cst_8 = arith.constant dense<0.000000e+00> : vector<16xf32>
    %14 = vector.multi_reduction <add>, %13, %cst_8 [0] : vector<32x16xf32> to vector<16xf32>
    %15 = vector.shape_cast %14 : vector<16xf32> to vector<1x16xf32>
    %cst_9 = arith.constant 3.125000e-02 : f32
    %16 = vector.broadcast %cst_9 : f32 to vector<1x16xf32>
    %17 = arith.mulf %15, %16 : vector<1x16xf32>
    %cst_10 = arith.constant 9.99999974E-6 : f32
    %18 = vector.broadcast %cst_10 : f32 to vector<1x16xf32>
    %19 = arith.addf %17, %18 : vector<1x16xf32>
    %20 = math.rsqrt %19 : vector<1x16xf32>
    %21 = vector.broadcast %20 : vector<1x16xf32> to vector<32x16xf32>
    %22 = arith.mulf %12, %21 : vector<32x16xf32>
    %c0_11 = arith.constant 0 : index
    %c0_12 = arith.constant 0 : index
    %23 = vector.load %arg5[%c0_11, %c0_12] : memref<32x1xf32, #tpu.memory_space<vmem>>, vector<32x1xf32>
    %24 = vector.broadcast %23 : vector<32x1xf32> to vector<32x16xf32>
    %25 = arith.mulf %22, %24 : vector<32x16xf32>
    %c0_13 = arith.constant 0 : index
    %c0_14 = arith.constant 0 : index
    %26 = vector.load %arg6[%c0_13, %c0_14] : memref<32x1xf32, #tpu.memory_space<vmem>>, vector<32x1xf32>
    %27 = vector.broadcast %26 : vector<32x1xf32> to vector<32x16xf32>
    %28 = arith.addf %25, %27 : vector<32x16xf32>
    %cst_15 = arith.constant 0.000000e+00 : f32
    %29 = vector.broadcast %cst_15 : f32 to vector<32x16xf32>
    %30 = arith.maximumf %28, %29 : vector<32x16xf32>
    %c0_16 = arith.constant 0 : index
    %c0_17 = arith.constant 0 : index
    %c0_18 = arith.constant 0 : index
    %31 = vector.load %arg7[%c0_16, %c0_17, %c0_18] : memref<1x32x16xf32, #tpu.memory_space<vmem>>, vector<1x32x16xf32>
    %32 = vector.shape_cast %31 : vector<1x32x16xf32> to vector<32x16xf32>
    %33 = vector.shape_cast %30 : vector<32x16xf32> to vector<1x32x16xf32>
    tpu.vector_store %arg7[%c0_16, %c0_17, %c0_18], %33 {strides = array<i32>} : memref<1x32x16xf32, #tpu.memory_space<vmem>>, vector<1x32x16xf32>,
    return
  }
  func.func @transform_0(%arg0: i32, %arg1: i32) -> (i32, i32, i32) {
    %c0_i32 = arith.constant 0 : i32
    %c0_i32_0 = arith.constant 0 : i32
    return %arg0, %c0_i32, %arg1 : i32, i32, i32
  }
  func.func @transform_1(%arg0: i32, %arg1: i32) -> (i32, i32) {
    %c0_i32 = arith.constant 0 : i32
    %c0_i32_0 = arith.constant 0 : i32
    %c0_i32_1 = arith.constant 0 : i32
    return %c0_i32, %c0_i32_0 : i32, i32
  }
  func.func @transform_2(%arg0: i32, %arg1: i32) -> (i32, i32) {
    %c0_i32 = arith.constant 0 : i32
    %c0_i32_0 = arith.constant 0 : i32
    %c0_i32_1 = arith.constant 0 : i32
    return %c0_i32, %c0_i32_0 : i32, i32
  }
  func.func @transform_3(%arg0: i32, %arg1: i32) -> (i32, i32) {
    %c0_i32 = arith.constant 0 : i32
    %c0_i32_0 = arith.constant 0 : i32
    %c0_i32_1 = arith.constant 0 : i32
    return %c0_i32, %c0_i32_0 : i32, i32
  }
  func.func @transform_4(%arg0: i32, %arg1: i32) -> (i32, i32) {
    %c0_i32 = arith.constant 0 : i32
    %c0_i32_0 = arith.constant 0 : i32
    %c0_i32_1 = arith.constant 0 : i32
    return %c0_i32, %c0_i32_0 : i32, i32
  }
  func.func @transform_5(%arg0: i32, %arg1: i32) -> (i32, i32, i32) {
    %c0_i32 = arith.constant 0 : i32
    %c0_i32_0 = arith.constant 0 : i32
    return %arg0, %c0_i32, %arg1 : i32, i32, i32
  }
}

</mosaic_0001>

<bundles_post_ra>
// kernel: tpu_custom_call.1
= control target key start
LH: loop header
LB: loop body
LE: loop exit
PB: predicated region body
PF: predicated region fallthrough
CT: control target
= control target key end

     0   :  { %s686_s18 = smov 0   ;;  %s688_s19 = smov 0   ;;  %s787_s0 = inlined_call_operand.vmem [shape: f32[2,4,16], index: 0, kind: input, shape index: {}]   ;;  %s788_s1 = inlined_call_operand.vmem [shape: f32[32,4], index: 1, kind: input, shape index: {}]   ;;  %s789_s2 = inlined_call_operand.vmem [shape: f32[32,1], index: 2, kind: input, shape index: {}]   ;;  %s790_s3 = inlined_call_operand.vmem [shape: f32[32,1], index: 3, kind: input, shape index: {}]   ;;  %s791_s4 = inlined_call_operand.vmem [shape: f32[32,1], index: 4, kind: input, shape index: {}]   ;;  %s792_s5 = inlined_call_operand.vmem [shape: f32[2,32,16], index: 5, kind: output, shape index: {}]  }
   0x1   :  { %s690_s20 = smov 0  }
   0x2 LB: > { %s27_s21 = sadd.s32 1, %s649_s19  ;;  %p575_p0 = scmp.ge.s32.totalorder %s653_s20, 1  ;;  %s653_s20 = sphi %s690_s20, %s15_s20   ;;  %s649_s19 = sphi %s688_s19, %s794_s19   ;;  %s645_s18 = sphi %s686_s18, %s793_s18  }
   0x3   : > { %p29_p1 = scmp.ge.s32.totalorder %s27_s21, 2  ;;  %p205_p2 = scmp.lt.s32.totalorder %s653_s20, 3 }
   0x5   : > { %s796_s21 = smov (%p29_p1, %s27_s21), 0  ;;  %p206_p3 = pnand %p575_p0, %p205_p2 }
   0x6   : > { %p238_p4 = scmp.lt.s32.totalorder (!%p206_p3), %s645_s18, 1 }
   0x7   : > { %209 = sbr.rel (%p206_p3) target bundleno = 287 (0x11f), region = 40 }
   0xc   : > { %v253_v0 = vld [vmem:[%s788_s1] sm:$0xff]  ;;  %vm282_vm0 = vcmask 31744   ;;  %v255_v1 = vld [vmem:[%s788_s1 + $0x10] sm:$0xff]  ;;  %s798_s18 = smov (!%p238_p4, %s645_s18), 1  ;;  %v655_v4 = vmov 0   ;;  %vm295_vm1 = vcmask 1043456  }
   0xd   : > { %594 = vmatprep.mubr.msk.f32.mxu0 %vm282_vm0, %v253_v0  ;;  %597 = vmatprep.mubr.msk.f32.mxu1 %vm282_vm0, %v255_v1  ;;  %v258_v2 = vld [vmem:[%s789_s2] sm:$0xff]  ;;  %v260_v3 = vld [vmem:[%s789_s2 + $0x10] sm:$0xff]  ;;  %s576_s30 = sshll.u32 %s798_s18, 2  ;;  %v254_v6 = vld [vmem:[%s788_s1 + $0x8] sm:$0xff]  ;;  %vm384_vm2 = vcmask 130048   ;;  %s586_s12 = sshll.u32 %s798_s18, 5 }
   0xe   : > { %627 = vset.pattern.permute.xlu0 %v655_v4  ;;  %628 = vset.pattern.permute.xlu1 %v655_v4  ;;  %s244_s8 = scalar_lea.vmem %s787_s0, %s576_s30  ;;  %v256_v7 = vld [vmem:[%s788_s1 + $0x18] sm:$0xff]  ;;  %v259_v8 = vld [vmem:[%s789_s2 + $0x8] sm:$0xff]  ;;  %v427_v10 = vld [vmem:[%s790_s3] sm:$0xff]  ;;  %s252_s15 = scalar_lea.vmem %s792_s5, %s586_s12 }
   0xf   : > { %264 = vperm.xlu0 %627, %v258_v2   ;;  %274 = vperm.xlu1 %628, %v260_v3   ;;  %v257_v5 = vld [vmem:[%s244_s8] sm:$0xf]  ;;  %v261_v9 = vld [vmem:[%s789_s2 + $0x18] sm:$0xff]  ;;  %v428_v11 = vld [vmem:[%s790_s3 + $0x8] sm:$0xff] }
  0x10   : > { %592 = vmatprep.subr.msk.mxu0 %vm295_vm1, %v257_v5  ;;  %600 = vmatprep.subr.msk.mxu1 %vm295_vm1, %v257_v5  ;;  %v429_v12 = vld [vmem:[%s790_s3 + $0x10] sm:$0xff]  ;;  %v430_v13 = vld [vmem:[%s790_s3 + $0x18] sm:$0xff]  ;;  %v455_v14 = vld [vmem:[%s791_s4] sm:$0xff] }
  0x11   : > { %593 = vmatpush3.msk.msra.mxu0 %vm295_vm1, %v257_v5  ;;  %601 = vmatpush3.msk.msra.mxu1 %vm295_vm1, %v257_v5  ;;  %v456_v15 = vld [vmem:[%s791_s4 + $0x8] sm:$0xff]  ;;  %v457_v16 = vld [vmem:[%s791_s4 + $0x10] sm:$0xff]  ;;  %v458_v17 = vld [vmem:[%s791_s4 + $0x18] sm:$0xff] }
  0x12   : > { %595 = vmatmul.mubr.msk.f32.vlgmr.msra.gmra.mxu0 %vm282_vm0, %v254_v6  ;;  %598 = vmatmul.mubr.msk.f32.vlgmr.msra.gmra.mxu1 %vm282_vm0, %v256_v7 }
  0x13   : > { %269 = vperm.xlu0 %627, %v259_v8   ;;  %279 = vperm.xlu1 %628, %v261_v9  }
  0x17   : > { %433 = vperm.xlu0 %627, %v427_v10   ;;  %438 = vperm.xlu1 %628, %v428_v11  }
  0x1b   : > { %443 = vperm.xlu0 %627, %v429_v12   ;;  %448 = vperm.xlu1 %628, %v430_v13  }
  0x1f   : > { %461 = vperm.xlu0 %627, %v455_v14   ;;  %466 = vperm.xlu1 %628, %v456_v15  }
  0x23   : > { %471 = vperm.xlu0 %627, %v457_v16   ;;  %476 = vperm.xlu1 %628, %v458_v17  }
  0x8a   : > { %v265_v18 = vpop.permute.xlu0 %264  ;;  %v275_v19 = vpop.permute.xlu1 %274 }
  0x8e   : > { %v270_v20 = vpop.permute.xlu0 %269  ;;  %v280_v28 = vpop.permute.xlu1 %279 }
  0x92   : > { %v434_v3 = vpop.permute.xlu0 %433  ;;  %v439_v4 = vpop.permute.xlu1 %438 }
  0x96   : > { %v444_v5 = vpop.permute.xlu0 %443  ;;  %v449_v6 = vpop.permute.xlu1 %448 }
  0x9a   : > { %v462_v7 = vpop.permute.xlu0 %461  ;;  %v467_v8 = vpop.permute.xlu1 %466 }
  0xd2   : > { %v596_v21 = vpop.f32.mrf.mxu0  ;;  %v599_v22 = vpop.f32.mrf.mxu1 }
  0xd3   : > { %v371_v23 = vadd.f32 %v596_v21, %v270_v20  ;;  %v381_v30 = vadd.f32 %v599_v22, %v280_v28 }
  0xd4   : > { %v365_v24 = vpop.f32.mrf.mxu0  ;;  %v375_v25 = vpop.f32.mrf.mxu1 }
  0xd5   : > { %v366_v26 = vadd.f32 %v365_v24, %v265_v18  ;;  %v376_v27 = vadd.f32 %v375_v25, %v275_v19  ;;  %v386_v29 = vsel %vm384_vm2, %v371_v23, 0.0  ;;  %v390_v35 = vsel %vm384_vm2, %v381_v30, 0.0  ;;  %v472_v18 = vpop.permute.xlu0 %471  ;;  %v477_v19 = vpop.permute.xlu1 %476 }
  0xd7   : > { %v385_v31 = vsel %vm384_vm2, %v366_v26, 0.0  ;;  %v388_v33 = vsel %vm384_vm2, %v376_v27, 0.0 }
  0xd8   : > { %v387_v32 = vadd.f32 %v386_v29, %v385_v31 }
  0xda   : > { %v389_v34 = vadd.f32 %v388_v33, %v387_v32 }
  0xdc   : > { %v391_v36 = vadd.f32 %v390_v35, %v389_v34 }
  0xde   : > { %v392_v37 = vrot.slane %v391_v36, 4 }
  0xe0   : > { %v393_v38 = vadd.f32 %v392_v37, %v391_v36 }
  0xe2   : > { %v394_v39 = vrot.slane %v393_v38, 2 }
  0xe4   : > { %v395_v40 = vadd.f32 %v394_v39, %v393_v38 }
  0xe6   : > { %v396_v41 = vrot.slane %v395_v40, 1 }
  0xe8   : > { %v397_v42 = vadd.f32 %v396_v41, %v395_v40 }
  0xea   : > { %v398_v43 = vmul.f32 0.03125, %v397_v42 }
  0xec   : > { %v399_v44 = vsub.f32 %v366_v26, %v398_v43  ;;  %v400_v45 = vsub.f32 %v371_v23, %v398_v43  ;;  %v401_v46 = vsub.f32 %v376_v27, %v398_v43  ;;  %v402_v47 = vsub.f32 %v381_v30, %v398_v43 }
  0xee   : > { %v403_v48 = vmul.f32 %v399_v44, %v399_v44  ;;  %v404_v49 = vmul.f32 %v400_v45, %v400_v45  ;;  %v405_v50 = vmul.f32 %v401_v46, %v401_v46  ;;  %v406_v51 = vmul.f32 %v402_v47, %v402_v47 }
  0xf0   : > { %v407_v52 = vsel %vm384_vm2, %v403_v48, 0.0  ;;  %v408_v53 = vsel %vm384_vm2, %v404_v49, 0.0  ;;  %v410_v55 = vsel %vm384_vm2, %v405_v50, 0.0  ;;  %v412_v57 = vsel %vm384_vm2, %v406_v51, 0.0 }
  0xf1   : > { %v409_v54 = vadd.f32 %v408_v53, %v407_v52 }
  0xf3   : > { %v411_v56 = vadd.f32 %v410_v55, %v409_v54 }
  0xf5   : > { %v413_v58 = vadd.f32 %v412_v57, %v411_v56 }
  0xf7   : > { %v414_v59 = vrot.slane %v413_v58, 4 }
  0xf9   : > { %v415_v60 = vadd.f32 %v414_v59, %v413_v58 }
  0xfb   : > { %v416_v61 = vrot.slane %v415_v60, 2 }
  0xfd   : > { %v417_v62 = vadd.f32 %v416_v61, %v415_v60 }
  0xff   : > { %v418_v63 = vrot.slane %v417_v62, 1 }
 0x101   : > { %v419_v0 = vadd.f32 %v418_v63, %v417_v62 }
 0x103   : > { %v420_v1 = vmul.f32 0.03125, %v419_v0 }
 0x105   : > { %v421_v2 = vadd.f32 1e-05, %v420_v1 }
 0x107   : > { %629 = vrsqrt.f32 %v421_v2 }
 0x114   : > { %v630_v9 = vpop.eup %629 }
 0x115   : > { %v423_v10 = vmul.f32 %v630_v9, %v399_v44  ;;  %v424_v11 = vmul.f32 %v630_v9, %v400_v45  ;;  %v425_v12 = vmul.f32 %v630_v9, %v401_v46  ;;  %v426_v13 = vmul.f32 %v630_v9, %v402_v47 }
 0x117   : > { %v451_v14 = vmul.f32 %v434_v3, %v423_v10  ;;  %v452_v15 = vmul.f32 %v439_v4, %v424_v11  ;;  %v453_v16 = vmul.f32 %v444_v5, %v425_v12  ;;  %v454_v17 = vmul.f32 %v449_v6, %v426_v13 }
 0x119   : > { %v479_v20 = vadd.f32 %v462_v7, %v451_v14  ;;  %v480_v21 = vadd.f32 %v467_v8, %v452_v15  ;;  %v481_v22 = vadd.f32 %v472_v18, %v453_v16  ;;  %v482_v23 = vadd.f32 %v477_v19, %v454_v17 }
 0x11b   : > { %v483_v24 = vmax.f32 %v479_v20, 0.0  ;;  %v484_v25 = vmax.f32 %v480_v21, 0.0  ;;  %v485_v26 = vmax.f32 %v481_v22, 0.0  ;;  %v486_v27 = vmax.f32 %v482_v23, 0.0 }
 0x11d   : > { %487 = vst.msk [vmem:[%s252_s15] sm:$0xff] %vm384_vm2, %v483_v24  ;;  %488 = vst.msk [vmem:[%s252_s15 + $0x8] sm:$0xff] %vm384_vm2, %v484_v25 }
 0x11e   : > { %489 = vst.msk [vmem:[%s252_s15 + $0x10] sm:$0xff] %vm384_vm2, %v485_v26  ;;  %490 = vst.msk [vmem:[%s252_s15 + $0x18] sm:$0xff] %vm384_vm2, %v486_v27 }
 0x11f PF: > { %s15_s20 = sadd.s32 1, %s653_s20   ;;  %s793_s18 = smov %s649_s19 }
 0x120   : > { %p12_p5 = scmp.ge.s32.totalorder %s15_s20, 4   ;;  %s794_s19 = smov %s796_s21 }
 0x122   :  { %14 = sbr.rel (!%p12_p5) target bundleno = 2 (0x2), region = 70 }

</bundles_post_ra>
